<compile_context>
chip_gen: v5e
topology: v5e:2x2
jax: 0.10.0
libtpu: 0.0.40
codegen_flags: <defaults>
</compile_context>

<pallas_src>
import math

import jax
import jax.numpy as jnp
from jax.experimental import pallas as pl

EMBED_DIM = 32
NUM_HEADS = 4
HEAD_DIM = EMBED_DIM // NUM_HEADS
SEQ_LEN = 8
BATCH = 2
MAX_LEN = 16

LANES = 128          # every slab block is 128 lanes wide (tile aligned)
AUG = 40             # augmented x width: 32 data cols + 1 ones col + pad to 8-mult

# row offsets of the blocks inside the packed constant slab (all 8-multiples)
R_WQ, R_WK, R_WV, R_WQR, R_WKR = 0, AUG, 2 * AUG, 3 * AUG, 4 * AUG
R_COS = 5 * AUG                                   # 200
R_SIN = R_COS + BATCH * SEQ_LEN                   # 216
R_AMASK = R_SIN + BATCH * SEQ_LEN                 # 232
R_BO = R_AMASK + BATCH * SEQ_LEN                  # 248
R_HM = R_BO + BATCH * SEQ_LEN                     # 264
R_WO = R_HM + NUM_HEADS * BATCH * SEQ_LEN         # 328
SLAB_ROWS = R_WO + EMBED_DIM                      # 360


def rope_mha_kernel(x_ref, slab_ref, out_ref):
    """Single fused step over all B*T tokens (no grid, 2 inputs)."""
    D, hd = EMBED_DIM, HEAD_DIM
    BT = BATCH * SEQ_LEN
    S = NUM_HEADS * BT

    x = x_ref[...]                                            # (16, 40)

    # 5 independent projection pushes: q, k, v and pre-rotated q, k copies.
    # Biases ride on the ones-column of x; RoPE rotation is baked into the
    # rotated weight copies, so nothing else touches the MXU before attention.
    yq = jnp.dot(x, slab_ref[R_WQ:R_WQ + AUG, :], preferred_element_type=jnp.float32)
    yk = jnp.dot(x, slab_ref[R_WK:R_WK + AUG, :], preferred_element_type=jnp.float32)
    yv = jnp.dot(x, slab_ref[R_WV:R_WV + AUG, :], preferred_element_type=jnp.float32)
    yqr = jnp.dot(x, slab_ref[R_WQR:R_WQR + AUG, :], preferred_element_type=jnp.float32)
    ykr = jnp.dot(x, slab_ref[R_WKR:R_WKR + AUG, :], preferred_element_type=jnp.float32)

    cosp = slab_ref[R_COS:R_COS + BT, :]                      # (16, 128)
    sinp = slab_ref[R_SIN:R_SIN + BT, :]
    q = yq * cosp + yqr * sinp                                # RoPE'd, lanes >= D are 0
    k = yk * cosp + ykr * sinp
    v = yv

    # head-mask / denominator map: lane d belongs to head d//hd (d < D);
    # pad lanes (>= D) are 1 so their denominator stays finite (no 0 * inf).
    hm = slab_ref[R_HM:R_HM + S, :]                           # (64, 128)

    # per-(head, key) expansion of K/V: sublane tile + lane mask (no matmul).
    k_bd = jnp.concatenate([k, k, k, k], axis=0) * hm         # (64, 128)
    v_bd = jnp.concatenate([v, v, v, v], axis=0) * hm

    # scores: rows = (batch, query) tokens, lanes = (head, batch', key).
    s = jax.lax.dot_general(q, k_bd, (((1,), (1,)), ((), ())),
                            preferred_element_type=jnp.float32)          # (16, 64)
    amask = slab_ref[R_AMASK:R_AMASK + BT, :]                            # (16, 128)
    s = s + amask[:, :S]

    # softmax, shifted by the global row max (shift-invariant, so the per-head
    # normalisation below stays exact); masked lanes exp to exactly 0.
    m = jnp.max(s, axis=-1, keepdims=True)
    p = jnp.exp(s - m)

    # PV and the per-head denominator are two independent MXU pushes; normalise
    # after PV so the reciprocal sits off the serial MXU chain.
    o_un = jnp.dot(p, v_bd, preferred_element_type=jnp.float32)          # (16, 128)
    denom = jnp.dot(p, hm, preferred_element_type=jnp.float32)           # (16, 128)
    inv = pl.reciprocal(denom, approx=True)                              # EUP slot
    inv = inv * (2.0 - denom * inv)                                      # Newton step -> f32 accuracy
    o = o_un * inv                                                       # heads already concat'd in lanes

    wo = slab_ref[R_WO:R_WO + D, :]                                      # (32, 128) col-padded
    bo = slab_ref[R_BO:R_BO + BT, :]                                     # (16, 128)
    out = jnp.dot(o[:, :D], wo, preferred_element_type=jnp.float32) + bo
    out_ref[...] = out.astype(out_ref.dtype)                             # lane-dense store


def _pack_slab(params, cos, sin, mask, B, T):
    """Pack every weight / bias / RoPE table / mask into one lane-dense
    (SLAB_ROWS, 128) f32 slab so the kernel takes exactly two inputs."""
    wq, bq, wk, bk, wv, bv, wo, bo = params
    D, hd, P = EMBED_DIM, HEAD_DIM, LANES
    BT, S = B * T, NUM_HEADS * B * T
    scale = 1.0 / math.sqrt(hd)

    # signed rotate-half permutation: rot(t) = concat([-t2, t1]) == t @ R
    half = D // 2
    R = jnp.zeros((D, D), jnp.float32)
    R = R.at[jnp.arange(half) + half, jnp.arange(half)].set(-1.0)
    R = R.at[jnp.arange(half), jnp.arange(half) + half].set(1.0)

    def wblock(w, b):
        # (D,D) weight + (1,D) bias -> (AUG,128); bias row multiplies x's ones col.
        blk = jnp.zeros((AUG, P), jnp.float32)
        blk = blk.at[:D, :D].set(w)
        blk = blk.at[D, :D].set(b[0])
        return blk

    wq_s, bq_s = wq * scale, bq * scale          # fold 1/sqrt(head_dim) into q proj
    blocks = [wblock(wq_s, bq_s), wblock(wk, bk), wblock(wv, bv),
              wblock(wq_s @ R, bq_s @ R),        # pre-rotated copies for RoPE
              wblock(wk @ R, bk @ R)]

    def pad_lanes(a):
        r, c = a.shape
        return jnp.concatenate([a.astype(jnp.float32),
                                jnp.zeros((r, P - c), jnp.float32)], axis=1)

    cosB = pad_lanes(jnp.tile(cos, (B, 1)))      # (BT, 128)
    sinB = pad_lanes(jnp.tile(sin, (B, 1)))

    # additive mask over (row=(b,i), lane=(h,b',j)): user mask within a batch,
    # -1e9 across batches; replicated per head along lanes.
    r = jnp.arange(BT)
    b_r, i_r = r // T, r % T
    c = jnp.arange(S)
    h_c, b_c, j_c = c // BT, (c % BT) // T, c % T
    amask = jnp.where(b_r[:, None] == b_c[None, :],
                      mask[i_r[:, None], j_c[None, :]], -1e9)
    amask_p = pad_lanes(amask)                   # (BT, 128), lanes >= S unused

    bo_t = pad_lanes(jnp.tile(bo, (BT, 1)))      # (BT, 128)

    d_l = jnp.arange(P)
    hm = (((d_l[None, :] // hd) == h_c[:, None]) | (d_l[None, :] >= D))
    hm = hm.astype(jnp.float32)                  # (S, 128)

    wo_cp = pad_lanes(wo)                        # (D, 128)

    slab = jnp.concatenate(blocks + [cosB, sinB, amask_p, bo_t, hm, wo_cp], axis=0)
    assert slab.shape == (SLAB_ROWS, LANES)
    return slab


def rope_mha(x, mask, params, cos, sin):
    """Fused RoPE multi-head attention forward (MHA / gqa=False branch)."""
    B, T, D = x.shape
    slab = _pack_slab(params, cos, sin, mask, B, T)

    # fold batch into one token axis and append the ones column (bias fold),
    # zero-padded to an 8-multiple so every slab row offset stays tile aligned.
    x2d = x.reshape(B * T, D).astype(jnp.float32)
    aug = jnp.zeros((B * T, AUG - D), jnp.float32).at[:, 0].set(1.0)
    x_aug = jnp.concatenate([x2d, aug], axis=1)               # (BT, 40)

    out_pad = pl.pallas_call(
        rope_mha_kernel,
        out_shape=jax.ShapeDtypeStruct((B * T, LANES), jnp.float32),
    )(x_aug, slab)                                            # 2 inputs, 2 DMAs

    return out_pad[:, :D].reshape(B, T, D).astype(x.dtype)


def make_rope_tables(max_len, d, dtype=jnp.float32):
    inv_freq = 1.0 / (10000.0 ** (jnp.arange(0, d, 2, dtype=jnp.float32) / d))
    pos = jnp.arange(max_len, dtype=jnp.float32)
    angles = pos[:, None] * inv_freq[None, :]                 # (max_len, d/2)
    cos = jnp.concatenate([jnp.cos(angles), jnp.cos(angles)], axis=-1)
    sin = jnp.concatenate([jnp.sin(angles), jnp.sin(angles)], axis=-1)
    return cos.astype(dtype), sin.astype(dtype)


def reference(x, mask, params, cos, sin):
    """Pure-JAX reference of the same forward semantics (full f32 precision)."""
    wq, bq, wk, bk, wv, bv, wo, bo = params
    B, T, D = x.shape
    hp = jax.lax.Precision.HIGHEST
    q = jnp.dot(x, wq, precision=hp) + bq
    k = jnp.dot(x, wk, precision=hp) + bk
    v = jnp.dot(x, wv, precision=hp) + bv

    def rope(t):
        t1, t2 = t[..., : D // 2], t[..., D // 2:]
        return t * cos + jnp.concatenate([-t2, t1], axis=-1) * sin

    q, k = rope(q), rope(k)
    qh = q.reshape(B, T, NUM_HEADS, HEAD_DIM).transpose(0, 2, 1, 3)
    kh = k.reshape(B, T, NUM_HEADS, HEAD_DIM).transpose(0, 2, 1, 3)
    vh = v.reshape(B, T, NUM_HEADS, HEAD_DIM).transpose(0, 2, 1, 3)
    s = jnp.einsum("bhqd,bhkd->bhqk", qh, kh, precision=hp) / math.sqrt(HEAD_DIM) + mask
    p = jax.nn.softmax(s, axis=-1)
    o = jnp.einsum("bhqk,bhkd->bhqd", p, vh, precision=hp)
    o = o.transpose(0, 2, 1, 3).reshape(B, T, D)
    return jnp.dot(o, wo, precision=hp) + bo


if __name__ == "__main__":
    key = jax.random.PRNGKey(0)
    ks = jax.random.split(key, 10)
    D = EMBED_DIM

    x = jax.random.normal(ks[0], (BATCH, SEQ_LEN, D), dtype=jnp.float32)

    # deterministic synthetic parameters (nn.Linear(D, D) x 4: q, k, v, out)
    def lin(kw, kb):
        w = jax.random.normal(kw, (D, D), dtype=jnp.float32) * (1.0 / math.sqrt(D))
        b = jax.random.normal(kb, (1, D), dtype=jnp.float32) * 0.02
        return w, b

    wq, bq = lin(ks[1], ks[2])
    wk, bk = lin(ks[3], ks[4])
    wv, bv = lin(ks[5], ks[6])
    wo, bo = lin(ks[7], ks[8])
    params = (wq, bq, wk, bk, wv, bv, wo, bo)

    # additive causal mask [T, T]
    causal = jnp.tril(jnp.ones((SEQ_LEN, SEQ_LEN), dtype=jnp.float32))
    mask = jnp.where(causal > 0, 0.0, -1e9).astype(jnp.float32)

    cos_full, sin_full = make_rope_tables(MAX_LEN, D)
    cos, sin = cos_full[:SEQ_LEN], sin_full[:SEQ_LEN]

    out = jax.block_until_ready(rope_mha(x, mask, params, cos, sin))
    ref = jax.block_until_ready(reference(x, mask, params, cos, sin))

    assert out.shape == (BATCH, SEQ_LEN, D)
    # Newton-refined reciprocal + exact f32 MXU matmuls -> expected error ~1e-6.
    err = jnp.max(jnp.abs(out - ref))
    assert jnp.allclose(out, ref, rtol=1e-4, atol=1e-4), f"max abs err {err}"

    print("KERNEL_OK")
</pallas_src>

<mosaic_0001>
module attributes {stable_mosaic.version = 11 : i64} {
  func.func @rope_mha_kernel(%arg0: memref<16x40xf32, #tpu.memory_space<vmem>>, %arg1: memref<360x128xf32, #tpu.memory_space<vmem>>, %arg2: memref<16x128xf32, #tpu.memory_space<vmem>>) attributes {dimension_semantics = [], scalar_prefetch = 0 : i64, scratch_operands = 0 : i64, tpu.core_type = #tpu.core_type<tc>} {
    %c0 = arith.constant 0 : index
    %c0_0 = arith.constant 0 : index
    %0 = vector.load %arg0[%c0, %c0_0] : memref<16x40xf32, #tpu.memory_space<vmem>>, vector<16x40xf32>
    %c0_1 = arith.constant 0 : index
    %c0_2 = arith.constant 0 : index
    %1 = vector.load %arg1[%c0_1, %c0_2] : memref<360x128xf32, #tpu.memory_space<vmem>>, vector<40x128xf32>
    %cst = arith.constant dense<0.000000e+00> : vector<16x128xf32>
    %2 = tpu.matmul %0, %1, %cst {dimension_numbers = #tpu.dot_dimension_numbers<[1], [0], [0], [1], [0, 0, 1, 1], [], []>} : vector<16x40xf32>, vector<40x128xf32>, vector<16x128xf32> -> vector<16x128xf32>
    %c40 = arith.constant 40 : index
    %c0_3 = arith.constant 0 : index
    %3 = vector.load %arg1[%c40, %c0_3] : memref<360x128xf32, #tpu.memory_space<vmem>>, vector<40x128xf32>
    %cst_4 = arith.constant dense<0.000000e+00> : vector<16x128xf32>
    %4 = tpu.matmul %0, %3, %cst_4 {dimension_numbers = #tpu.dot_dimension_numbers<[1], [0], [0], [1], [0, 0, 1, 1], [], []>} : vector<16x40xf32>, vector<40x128xf32>, vector<16x128xf32> -> vector<16x128xf32>
    %c80 = arith.constant 80 : index
    %c0_5 = arith.constant 0 : index
    %5 = vector.load %arg1[%c80, %c0_5] : memref<360x128xf32, #tpu.memory_space<vmem>>, vector<40x128xf32>
    %cst_6 = arith.constant dense<0.000000e+00> : vector<16x128xf32>
    %6 = tpu.matmul %0, %5, %cst_6 {dimension_numbers = #tpu.dot_dimension_numbers<[1], [0], [0], [1], [0, 0, 1, 1], [], []>} : vector<16x40xf32>, vector<40x128xf32>, vector<16x128xf32> -> vector<16x128xf32>
    %c120 = arith.constant 120 : index
    %c0_7 = arith.constant 0 : index
    %7 = vector.load %arg1[%c120, %c0_7] : memref<360x128xf32, #tpu.memory_space<vmem>>, vector<40x128xf32>
    %cst_8 = arith.constant dense<0.000000e+00> : vector<16x128xf32>
    %8 = tpu.matmul %0, %7, %cst_8 {dimension_numbers = #tpu.dot_dimension_numbers<[1], [0], [0], [1], [0, 0, 1, 1], [], []>} : vector<16x40xf32>, vector<40x128xf32>, vector<16x128xf32> -> vector<16x128xf32>
    %c160 = arith.constant 160 : index
    %c0_9 = arith.constant 0 : index
    %9 = vector.load %arg1[%c160, %c0_9] : memref<360x128xf32, #tpu.memory_space<vmem>>, vector<40x128xf32>
    %cst_10 = arith.constant dense<0.000000e+00> : vector<16x128xf32>
    %10 = tpu.matmul %0, %9, %cst_10 {dimension_numbers = #tpu.dot_dimension_numbers<[1], [0], [0], [1], [0, 0, 1, 1], [], []>} : vector<16x40xf32>, vector<40x128xf32>, vector<16x128xf32> -> vector<16x128xf32>
    %c200 = arith.constant 200 : index
    %c0_11 = arith.constant 0 : index
    %11 = vector.load %arg1[%c200, %c0_11] : memref<360x128xf32, #tpu.memory_space<vmem>>, vector<16x128xf32>
    %c216 = arith.constant 216 : index
    %c0_12 = arith.constant 0 : index
    %12 = vector.load %arg1[%c216, %c0_12] : memref<360x128xf32, #tpu.memory_space<vmem>>, vector<16x128xf32>
    %13 = arith.mulf %2, %11 : vector<16x128xf32>
    %14 = arith.mulf %8, %12 : vector<16x128xf32>
    %15 = arith.addf %13, %14 : vector<16x128xf32>
    %16 = arith.mulf %4, %11 : vector<16x128xf32>
    %17 = arith.mulf %10, %12 : vector<16x128xf32>
    %18 = arith.addf %16, %17 : vector<16x128xf32>
    %c264 = arith.constant 264 : index
    %c0_13 = arith.constant 0 : index
    %19 = vector.load %arg1[%c264, %c0_13] : memref<360x128xf32, #tpu.memory_space<vmem>>, vector<64x128xf32>
    %20 = tpu.concatenate %18, %18, %18, %18 in 0 : vector<16x128xf32>, vector<16x128xf32>, vector<16x128xf32>, vector<16x128xf32> -> vector<64x128xf32>
    %21 = arith.mulf %20, %19 : vector<64x128xf32>
    %22 = tpu.concatenate %6, %6, %6, %6 in 0 : vector<16x128xf32>, vector<16x128xf32>, vector<16x128xf32>, vector<16x128xf32> -> vector<64x128xf32>
    %23 = arith.mulf %22, %19 : vector<64x128xf32>
    %cst_14 = arith.constant dense<0.000000e+00> : vector<16x64xf32>
    %24 = tpu.matmul %15, %21, %cst_14 {dimension_numbers = #tpu.dot_dimension_numbers<[1], [1], [0], [0], [0, 0, 1, 0], [], []>} : vector<16x128xf32>, vector<64x128xf32>, vector<16x64xf32> -> vector<16x64xf32>
    %c232 = arith.constant 232 : index
    %c0_15 = arith.constant 0 : index
    %25 = vector.load %arg1[%c232, %c0_15] : memref<360x128xf32, #tpu.memory_space<vmem>>, vector<16x128xf32>
    %26 = vector.extract_strided_slice %25 {offsets = [0, 0], sizes = [16, 64], strides = [1, 1]} : vector<16x128xf32> to vector<16x64xf32>
    %27 = arith.addf %24, %26 : vector<16x64xf32>
    %cst_16 = arith.constant dense<0xFF800000> : vector<16xf32>
    %28 = vector.multi_reduction <maximumf>, %27, %cst_16 [1] : vector<16x64xf32> to vector<16xf32>
    %29 = vector.shape_cast %28 : vector<16xf32> to vector<16x1xf32>
    %30 = vector.broadcast %29 : vector<16x1xf32> to vector<16x64xf32>
    %31 = arith.subf %27, %30 : vector<16x64xf32>
    %32 = math.exp %31 : vector<16x64xf32>
    %cst_17 = arith.constant dense<0.000000e+00> : vector<16x128xf32>
    %33 = tpu.matmul %32, %23, %cst_17 {dimension_numbers = #tpu.dot_dimension_numbers<[1], [0], [0], [1], [0, 0, 1, 1], [], []>} : vector<16x64xf32>, vector<64x128xf32>, vector<16x128xf32> -> vector<16x128xf32>
    %cst_18 = arith.constant dense<0.000000e+00> : vector<16x128xf32>
    %34 = tpu.matmul %32, %19, %cst_18 {dimension_numbers = #tpu.dot_dimension_numbers<[1], [0], [0], [1], [0, 0, 1, 1], [], []>} : vector<16x64xf32>, vector<64x128xf32>, vector<16x128xf32> -> vector<16x128xf32>
    %35 = tpu.reciprocal %34 {approx = true} : vector<16x128xf32> -> vector<16x128xf32>
    %36 = arith.mulf %34, %35 : vector<16x128xf32>
    %cst_19 = arith.constant 2.000000e+00 : f32
    %37 = vector.broadcast %cst_19 : f32 to vector<16x128xf32>
    %38 = arith.subf %37, %36 : vector<16x128xf32>
    %39 = arith.mulf %35, %38 : vector<16x128xf32>
    %40 = arith.mulf %33, %39 : vector<16x128xf32>
    %c328 = arith.constant 328 : index
    %c0_20 = arith.constant 0 : index
    %41 = vector.load %arg1[%c328, %c0_20] : memref<360x128xf32, #tpu.memory_space<vmem>>, vector<32x128xf32>
    %c248 = arith.constant 248 : index
    %c0_21 = arith.constant 0 : index
    %42 = vector.load %arg1[%c248, %c0_21] : memref<360x128xf32, #tpu.memory_space<vmem>>, vector<16x128xf32>
    %43 = vector.extract_strided_slice %40 {offsets = [0, 0], sizes = [16, 32], strides = [1, 1]} : vector<16x128xf32> to vector<16x32xf32>
    %cst_22 = arith.constant dense<0.000000e+00> : vector<16x128xf32>
    %44 = tpu.matmul %43, %41, %cst_22 {dimension_numbers = #tpu.dot_dimension_numbers<[1], [0], [0], [1], [0, 0, 1, 1], [], []>} : vector<16x32xf32>, vector<32x128xf32>, vector<16x128xf32> -> vector<16x128xf32>
    %45 = arith.addf %44, %42 : vector<16x128xf32>
    %c0_23 = arith.constant 0 : index
    %c0_24 = arith.constant 0 : index
    %46 = vector.load %arg2[%c0_23, %c0_24] : memref<16x128xf32, #tpu.memory_space<vmem>>, vector<16x128xf32>
    tpu.vector_store %arg2[%c0_23, %c0_24], %45 {strides = array<i32>} : memref<16x128xf32, #tpu.memory_space<vmem>>, vector<16x128xf32>,
    return
  }
}

</mosaic_0001>

<bundles_post_ra>
// kernel: tpu_custom_call.1
= control target key start
LH: loop header
LB: loop body
LE: loop exit
PB: predicated region body
PF: predicated region fallthrough
CT: control target
= control target key end

     0   :  { %7 = vsyncpa [#allocation3], 0  ;;  %s610_s0 = inlined_call_operand.hbm [shape: f32[16,40], index: 0, kind: input, shape index: {}]   ;;  %s611_s1 = inlined_call_operand.hbm [shape: f32[360,128], index: 1, kind: input, shape index: {}]   ;;  %s612_s2 = inlined_call_operand.hbm [shape: f32[16,128], index: 2, kind: output, shape index: {}]  }
   0x1   :  { %8 = vsyncpa [#allocation6], 0 }
   0x2   :  { %9 = vsyncpa [#allocation4], 0  ;;  %s14_s11 = sshll.u32 %s610_s0, 4  ;;  %s502_s12 = smov [#allocation2]   ;;  %s15_s11 = int_to_ptr.hbm [resolvable:$true] %s14_s11 }
   0x3   :  { %s16_s13 = sshll.u32 %s502_s12, 4  ;;  %s27_s16 = sshll.u32 %s611_s1, 4  ;;  %s17_s13 = int_to_ptr.vmem [resolvable:$true] %s16_s13  ;;  %s28_s16 = int_to_ptr.hbm [resolvable:$true] %s27_s16 }
   0x4   :  { %s503_s17 = smov 128   ;;  %s504_s18 = smov 8  }
   0x5   :  { %22 = dma.hbm_to_vmem [thread:$0]  %s15_s11, 256, %s17_s13, [#allocation3], %s503_s17, %s503_s17, %s504_s18  }
   0x6   :  { %s505_s19 = smov [#allocation5]  }
   0x7   :  { %s29_s20 = sshll.u32 %s505_s19, 4  ;;  %s30_s20 = int_to_ptr.vmem [resolvable:$true] %s29_s20 }
   0x8   :  { %35 = dma.hbm_to_vmem [thread:$0]  %s28_s16, 5760, %s30_s20, [#allocation6], %s503_s17, %s503_s17, %s504_s18  }
   0x9   :  { %496 = dma.done.wait [#allocation3], 256  }
   0xa   :  { %497 = vsyncadd [#allocation3], 4294967040 }
   0xb   :  { %498 = dma.done.wait [#allocation6], 5760  }
   0xc   :  { %499 = vsyncadd [#allocation6], 4294961536  ;;  %v50_v0 = vld [vmem:[#allocation5 + $0x20] sm:$0xff]  ;;  %v141_v1 = vld [vmem:[#allocation5 + $0x98] sm:$0xff]  ;;  %vm51_vm0 = vcmask 326656   ;;  %vm258_vm1 = vcmask 523264  }
   0xd   :  { %v49_v2 = vld [vmem:[#allocation5 + $0x18] sm:$0xff]  ;;  %69 = vmatpush.msra.mxu0 %v50_v0  ;;  %153 = vmatpush.msra.mxu3 %v141_v1  ;;  %v140_v3 = vld [vmem:[#allocation5 + $0x90] sm:$0xff]  ;;  %v139_v5 = vld [vmem:[#allocation5 + $0x88] sm:$0xff]  ;;  %vm339_vm2 = vcmask 261120   ;;  %s506_s0 = smov [#allocation7]   ;;  %s377_s23 = sshll.u32 %s612_s2, 4  ;;  %s378_s23 = int_to_ptr.hbm [resolvable:$true] %s377_s23 }
   0xe   :  { %v48_v4 = vld [vmem:[#allocation5 + $0x10] sm:$0xff]  ;;  %v47_v6 = vld [vmem:[#allocation5 + $0x8] sm:$0xff]  ;;  %v138_v7 = vld [vmem:[#allocation5 + $0x80] sm:$0xff]  ;;  %s375_s1 = sshll.u32 %s506_s0, 4  ;;  %s376_s1 = int_to_ptr.vmem [resolvable:$true] %s375_s1 }
   0xf   :  { %70 = vmatpush.msra.mxu0 %v49_v2  ;;  %154 = vmatpush.msra.mxu3 %v140_v3  ;;  %v85_v8 = vld [vmem:[#allocation5 + $0x48] sm:$0xff]  ;;  %v84_v9 = vld [vmem:[#allocation5 + $0x40] sm:$0xff]  ;;  %v137_v11 = vld [vmem:[#allocation5 + $0x78] sm:$0xff] }
  0x10   :  { %v46_v10 = vld [vmem:[#allocation5] sm:$0xff]  ;;  %97 = vmatpush.msra.mxu1 %v85_v8  ;;  %v534_v12 = vld [vmem:[#allocation2] sm:$0xff]  ;;  %v83_v14 = vld [vmem:[#allocation5 + $0x38] sm:$0xff] }
  0x11   :  { %71 = vmatpush.msra.mxu0 %v48_v4  ;;  %155 = vmatpush.msra.mxu3 %v139_v5  ;;  %v169_v13 = vld [vmem:[#allocation5 + $0xc0] sm:$0xff]  ;;  %v168_v15 = vld [vmem:[#allocation5 + $0xb8] sm:$0xff]  ;;  %v82_v16 = vld [vmem:[#allocation5 + $0x30] sm:$0xff] }
  0x12   :  { %98 = vmatpush.msra.mxu1 %v84_v9  ;;  %v167_v17 = vld [vmem:[#allocation5 + $0xb0] sm:$0xff]  ;;  %v81_v18 = vld [vmem:[#allocation5 + $0x28] sm:$0xff]  ;;  %v540_v20 = vld [vmem:[#allocation2 + $0x8] sm:$0xff] }
  0x13   :  { %72 = vmatpush.msra.mxu0 %v47_v6  ;;  %156 = vmatpush.msra.mxu3 %v138_v7  ;;  %v166_v19 = vld [vmem:[#allocation5 + $0xa8] sm:$0xff]  ;;  %v165_v21 = vld [vmem:[#allocation5 + $0xa0] sm:$0xff]  ;;  %v557_v23 = vld [vmem:[#allocation5 + $0x138] sm:$0xff] }
  0x14   :  { %99 = vmatpush.msra.mxu1 %v83_v14  ;;  %v554_v22 = vld [vmem:[#allocation5 + $0x140] sm:$0xff]  ;;  %v560_v24 = vld [vmem:[#allocation5 + $0x130] sm:$0xff]  ;;  %v563_v26 = vld [vmem:[#allocation5 + $0x128] sm:$0xff] }
  0x15   :  { %73 = vmatpush.msra.mxu0 %v46_v10  ;;  %157 = vmatpush.msra.mxu3 %v137_v11  ;;  %v566_v27 = vld [vmem:[#allocation5 + $0x120] sm:$0xff]  ;;  %v569_v28 = vld [vmem:[#allocation5 + $0x118] sm:$0xff]  ;;  %v572_v29 = vld [vmem:[#allocation5 + $0x110] sm:$0xff] }
  0x16   :  { %391 = vmatmul.msk.f32.vlgmr.msra.gmra.mxu0 %vm51_vm0, %v534_v12  ;;  %397 = vmatmul.msk.f32.vlgmr.msra.gmra.mxu3 %vm51_vm0, %v534_v12  ;;  %v575_v31 = vld [vmem:[#allocation5 + $0x108] sm:$0xff]  ;;  %v194_v35 = vld [vmem:[#allocation5 + $0xd0] sm:$0xff]  ;;  %v195_v38 = vld [vmem:[#allocation5 + $0xd8] sm:$0xff] }
  0x17   :  { %181 = vmatpush.msrb.mxu0 %v169_v13  ;;  %100 = vmatpush.msra.mxu1 %v82_v16  ;;  %v193_v37 = vld [vmem:[#allocation5 + $0xc8] sm:$0xff]  ;;  %v196_v39 = vld [vmem:[#allocation5 + $0xe0] sm:$0xff]  ;;  %v113_v49 = vld [vmem:[#allocation5 + $0x70] sm:$0xff] }
  0x18   :  { %308 = vmatpush.msrb.mxu3 %v554_v22  ;;  %v112_v50 = vld [vmem:[#allocation5 + $0x68] sm:$0xff]  ;;  %125 = vmatpush.msra.mxu2 %v113_v49  ;;  %v111_v51 = vld [vmem:[#allocation5 + $0x60] sm:$0xff]  ;;  %v110_v53 = vld [vmem:[#allocation5 + $0x58] sm:$0xff] }
  0x19   :  { %182 = vmatpush.msrb.mxu0 %v168_v15  ;;  %101 = vmatpush.msra.mxu1 %v81_v18  ;;  %v109_v54 = vld [vmem:[#allocation5 + $0x50] sm:$0xff]  ;;  %v233_v4 = vld [vmem:[#allocation5 + $0xe8] sm:$0xff] }
  0x1a   :  { %393 = vmatmul.msk.f32.vlgmr.msra.gmra.mxu1 %vm51_vm0, %v534_v12  ;;  %309 = vmatpush.msrb.mxu3 %v557_v23  ;;  %v234_v13 = vld [vmem:[#allocation5 + $0xf0] sm:$0xff] }
  0x1b   :  { %183 = vmatpush.msrb.mxu0 %v167_v17  ;;  %126 = vmatpush.msra.mxu2 %v112_v50  ;;  %v338_v50 = vld [vmem:[#allocation5 + $0x100] sm:$0xff] }
  0x1c   :  { %310 = vmatpush.msrb.mxu3 %v560_v24 }
  0x1d   :  { %184 = vmatpush.msrb.mxu0 %v166_v19  ;;  %127 = vmatpush.msra.mxu2 %v111_v51 }
  0x1e   :  { %392 = vmatmul.msk.f32.gmra.mxu0 %vm51_vm0, %v540_v20  ;;  %398 = vmatmul.msk.f32.gmra.mxu3 %vm51_vm0, %v540_v20 }
  0x1f   :  { %185 = vmatpush.msrb.mxu0 %v165_v21  ;;  %311 = vmatpush.msrb.mxu3 %v563_v26 }
  0x20   :  { %128 = vmatpush.msra.mxu2 %v110_v53 }
  0x21   :  { %312 = vmatpush.msrb.mxu3 %v566_v27 }
  0x22   :  { %394 = vmatmul.msk.f32.gmra.mxu1 %vm51_vm0, %v540_v20  ;;  %129 = vmatpush.msra.mxu2 %v109_v54 }
  0x23   :  { %313 = vmatpush.msrb.mxu3 %v569_v28  ;;  %395 = vmatmul.msk.f32.vlgmr.msra.gmra.mxu2 %vm51_vm0, %v534_v12 }
  0x25   :  { %314 = vmatpush.msrb.mxu3 %v572_v29 }
  0x26   :  { %399 = vmatmul.msk.f32.vlgmr.msrb.gmra.mxu0 %vm51_vm0, %v534_v12 }
  0x27   :  { %315 = vmatpush.msrb.mxu3 %v575_v31 }
  0x2b   :  { %396 = vmatmul.msk.f32.gmra.mxu2 %vm51_vm0, %v540_v20 }
  0x2e   :  { %400 = vmatmul.msk.f32.gmra.mxu0 %vm51_vm0, %v540_v20 }
  0x93   :  { %v75_v25 = vpop.f32.mrf.mxu0 }
  0x94   :  { %v197_v61 = vmul.f32 %v193_v37, %v75_v25 }
  0x97   :  { %v103_v32 = vpop.f32.mrf.mxu1 }
  0x98   :  { %v203_v41 = vmul.f32 %v193_v37, %v103_v32  ;;  %v333_v32 = vld [vmem:[#allocation5 + $0x148] sm:$0xff] }
  0x99   :  { %v159_v57 = vpop.f32.mrf.mxu3 }
  0x9a   :  { %v199_v59 = vmul.f32 %v195_v38, %v159_v57 }
  0x9b   :  { %v78_v30 = vpop.f32.mrf.mxu0 }
  0x9c   :  { %v201_v62 = vadd.f32 %v199_v59, %v197_v61  ;;  %v198_v1 = vmul.f32 %v194_v35, %v78_v30  ;;  %v335_v30 = vld [vmem:[#allocation5 + $0x158] sm:$0xff] }
  0x9f   :  { %v106_v34 = vpop.f32.mrf.mxu1 }
  0xa0   :  { %v204_v36 = vmul.f32 %v194_v35, %v106_v34 }
  0xa1   :  { %v162_v63 = vpop.f32.mrf.mxu3 }
  0xa2   :  { %v200_v0 = vmul.f32 %v196_v39, %v162_v63 }
  0xa3   :  { %v187_v33 = vpop.f32.mrf.mxu0 }
  0xa4   :  { %v205_v42 = vmul.f32 %v195_v38, %v187_v33  ;;  %v202_v2 = vadd.f32 %v200_v0, %v198_v1 }
  0xa6   :  { %v207_v45 = vadd.f32 %v205_v42, %v203_v41  ;;  %v131_v3 = vpop.f32.mrf.mxu2 }
  0xa7   :  { %v231_v9 = vmul.f32 %v557_v23, %v131_v3  ;;  %v229_v12 = vmul.f32 %v563_v26, %v131_v3  ;;  %v227_v17 = vmul.f32 %v569_v28, %v131_v3  ;;  %v225_v20 = vmul.f32 %v575_v31, %v131_v3 }
  0xa8   :  { %v223_v47 = vmul.f32 %v557_v23, %v207_v45  ;;  %v221_v52 = vmul.f32 %v563_v26, %v207_v45  ;;  %v219_v56 = vmul.f32 %v569_v28, %v207_v45  ;;  %v217_v60 = vmul.f32 %v575_v31, %v207_v45  ;;  %v334_v31 = vld [vmem:[#allocation5 + $0x150] sm:$0xff] }
  0xab   :  { %v190_v40 = vpop.f32.mrf.mxu0 }
  0xac   :  { %v206_v43 = vmul.f32 %v196_v39, %v190_v40 }
  0xae   :  { %v208_v44 = vadd.f32 %v206_v43, %v204_v36  ;;  %v134_v6 = vpop.f32.mrf.mxu2 }
  0xaf   :  { %v232_v8 = vmul.f32 %v554_v22, %v134_v6  ;;  %v230_v11 = vmul.f32 %v560_v24, %v134_v6  ;;  %v228_v14 = vmul.f32 %v566_v27, %v134_v6  ;;  %v226_v19 = vmul.f32 %v572_v29, %v134_v6 }
  0xb0   :  { %v224_v46 = vmul.f32 %v554_v22, %v208_v44  ;;  %v222_v48 = vmul.f32 %v560_v24, %v208_v44  ;;  %v220_v55 = vmul.f32 %v566_v27, %v208_v44  ;;  %v218_v58 = vmul.f32 %v572_v29, %v208_v44  ;;  %v336_v29 = vld [vmem:[#allocation5 + $0x160] sm:$0xff] }
  0xb1   :  { %285 = vmatpush.msrb.mxu2 %v232_v8  ;;  %358 = vmatpush.msra.mxu0 %v336_v29 }
  0xb2   :  { %243 = vmatpush.xpose.msrb.mxu1 %v224_v46 }
  0xb3   :  { %286 = vmatpush.msrb.mxu2 %v231_v9  ;;  %359 = vmatpush.msra.mxu0 %v335_v30 }
  0xb5   :  { %287 = vmatpush.msrb.mxu2 %v230_v11  ;;  %360 = vmatpush.msra.mxu0 %v334_v31 }
  0xb6   :  { %244 = vmatpush.xpose.msrb.mxu1 %v223_v47  ;;  %v337_v47 = vld [vmem:[#allocation5 + $0xf8] sm:$0xff] }
  0xb7   :  { %288 = vmatpush.msrb.mxu2 %v229_v12  ;;  %361 = vmatpush.msra.mxu0 %v333_v32 }
  0xb9   :  { %289 = vmatpush.msrb.mxu2 %v228_v14 }
  0xba   :  { %245 = vmatpush.xpose.msrb.mxu1 %v222_v48 }
  0xbb   :  { %290 = vmatpush.msrb.mxu2 %v227_v17 }
  0xbd   :  { %291 = vmatpush.msrb.mxu2 %v226_v19 }
  0xbe   :  { %246 = vmatpush.xpose.msrb.mxu1 %v221_v52 }
  0xbf   :  { %292 = vmatpush.msrb.mxu2 %v225_v20 }
  0xc1   :  { %407 = vmatpush.msra.mxu2 %v336_v29 }
  0xc2   :  { %247 = vmatpush.xpose.msrb.mxu1 %v220_v55 }
  0xc3   :  { %408 = vmatpush.msra.mxu2 %v335_v30 }
  0xc5   :  { %409 = vmatpush.msra.mxu2 %v334_v31 }
  0xc6   :  { %248 = vmatpush.xpose.msrb.mxu1 %v219_v56 }
  0xc7   :  { %410 = vmatpush.msra.mxu2 %v333_v32 }
  0xca   :  { %249 = vmatpush.xpose.msrb.mxu1 %v218_v58 }
  0xce   :  { %250 = vmatpush.xpose.msrb.mxu1 %v217_v60 }
  0xd1   :  { %251 = vmatmul.f32.vlgmr.msrb.gmra.mxu1 %v201_v62 }
  0xd9   :  { %254 = vmatmul.f32.gmra.mxu1 %v202_v2 }
 0x14e   :  { %v252_v5 = vpop.f32.mrf.mxu1 }
 0x14f   :  { %v253_v7 = vadd.f32 %v252_v5, %v233_v4 }
 0x151   :  { %v259_v10 = vsel %vm258_vm1, %v253_v7, -inf }
 0x152   :  { %260 = vmax.xlane.f32.xlu0 %v259_v10 }
 0x156   :  { %v255_v15 = vpop.f32.mrf.mxu1 }
 0x157   :  { %v256_v16 = vadd.f32 %v255_v15, %v234_v13 }
 0x159   :  { %v262_v18 = vsel %vm258_vm1, %v256_v16, -inf }
 0x15a   :  { %263 = vmax.xlane.f32.xlu0 %v262_v18 }
 0x1c5   :  { %v261_v21 = vpop.xlane.xlu0 %260 }
 0x1c6   :  { %v265_v22 = vsub.f32 %v253_v7, %v261_v21 }
 0x1c8   :  { %v267_v23 = vmul.f32 1.442695, %v265_v22 }
 0x1ca   :  { %416 = vpow2.f32 %v267_v23 }
 0x1cd   :  { %v264_v24 = vpop.xlane.xlu0 %263 }
 0x1ce   :  { %v266_v25 = vsub.f32 %v256_v16, %v264_v24 }
 0x1d0   :  { %v417_v26 = vpop.eup %416  ;;  %v269_v27 = vmul.f32 1.442695, %v266_v25 }
 0x1d1   :  { %401 = vmatmul.msk.f32.vlgmr.msrb.gmra.mxu2 %vm258_vm1, %v417_v26  ;;  %403 = vmatmul.msk.f32.vlgmr.msrb.gmra.mxu3 %vm258_vm1, %v417_v26 }
 0x1d2   :  { %418 = vpow2.f32 %v269_v27 }
 0x1d8   :  { %v419_v28 = vpop.eup %418 }
 0x1d9   :  { %402 = vmatmul.msk.f32.gmra.mxu2 %vm258_vm1, %v419_v28  ;;  %404 = vmatmul.msk.f32.gmra.mxu3 %vm258_vm1, %v419_v28 }
 0x254   :  { %v317_v33 = vpop.f32.mrf.mxu3  ;;  %v294_v38 = vpop.f32.mrf.mxu2 }
 0x255   :  { %420 = vrcp.f32 %v317_v33 }
 0x25b   :  { %v421_v34 = vpop.eup %420 }
 0x25c   :  { %v325_v35 = vmul.f32 %v421_v34, %v317_v33  ;;  %v320_v36 = vpop.f32.mrf.mxu3  ;;  %v297_v45 = vpop.f32.mrf.mxu2 }
 0x25d   :  { %422 = vrcp.f32 %v320_v36 }
 0x25e   :  { %v327_v37 = vsub.f32 2.0, %v325_v35 }
 0x260   :  { %v329_v39 = vmul.f32 %v421_v34, %v327_v37 }
 0x262   :  { %v331_v40 = vmul.f32 %v329_v39, %v294_v38 }
 0x263   :  { %v423_v41 = vpop.eup %422 }
 0x264   :  { %v326_v42 = vmul.f32 %v423_v41, %v320_v36  ;;  %405 = vmatmul.msk.f32.vlgmr.msra.gmra.mxu0 %vm339_vm2, %v331_v40 }
 0x266   :  { %v328_v43 = vsub.f32 2.0, %v326_v42 }
 0x268   :  { %v330_v44 = vmul.f32 %v423_v41, %v328_v43 }
 0x26a   :  { %v332_v46 = vmul.f32 %v330_v44, %v297_v45 }
 0x26c   :  { %406 = vmatmul.msk.f32.vlgmr.msra.gmra.mxu2 %vm339_vm2, %v332_v46 }
 0x2e1   :  { %v363_v48 = vpop.f32.mrf.mxu0 }
 0x2e2   :  { %v364_v49 = vadd.f32 %v363_v48, %v337_v47 }
 0x2e4   :  { %369 = vst [vmem:[#allocation7] sm:$0xff] %v364_v49 }
 0x2ef   :  { %v366_v51 = vpop.f32.mrf.mxu2 }
 0x2f0   :  { %v367_v52 = vadd.f32 %v366_v51, %v338_v50 }
 0x2f2   :  { %370 = vst [vmem:[#allocation7 + $0x8] sm:$0xff] %v367_v52 }
 0x2f3   :  { %383 = dma.vmem_to_hbm [thread:$0]  %s376_s1, 256, %s378_s23, [#allocation4], %s503_s17, %s503_s17, %s504_s18  }
 0x2f4   :  { %500 = dma.done.wait [#allocation4], 256  }
 0x2f5   :  { %501 = vsyncadd [#allocation4], 4294967040 }
 0x2f6   :  { %388 = vsyncpa [#allocation3], 1 }
 0x2f7   :  { %389 = vsyncpa [#allocation6], 1 }
 0x2f8   :  { %390 = vsyncpa [#allocation4], 1 }

</bundles_post_ra>
